<compile_context>
chip_gen: v7x
topology: tpu7x:2x2x1
jax: 0.10.0
libtpu: 0.0.40
codegen_flags: <defaults>
</compile_context>

<pallas_src>
import functools

import jax
import jax.numpy as jnp
from jax.experimental import pallas as pl
from jax.experimental.pallas import tpu as pltpu


# ---------------------------------------------------------------------------
# Kernels
# ---------------------------------------------------------------------------

def _se_single_pass_kernel(x_ref, w1_ref, b1_ref, w2_ref, b2_ref, o_ref, *, inv_hw):
    # x_ref / o_ref : (Bt, C, HW)   w1_ref: (Cin, H1)  b1_ref: (1, H1)
    # w2_ref: (H1, Cout)            b2_ref: (1, Cout)
    # Squeeze: spatial mean with f32 accumulation.
    se = jnp.sum(x_ref[...], axis=-1, dtype=jnp.float32) * inv_hw          # (Bt, Cin)

    # Excitation: Linear -> ReLU -> Linear -> Sigmoid (tiny matvecs, f32).
    h = jnp.dot(se, w1_ref[...].astype(jnp.float32),
                preferred_element_type=jnp.float32) + b1_ref[...].astype(jnp.float32)
    h = jnp.maximum(h, 0.0)                                                 # (Bt, H1)
    s = jnp.dot(h, w2_ref[...].astype(jnp.float32),
                preferred_element_type=jnp.float32) + b2_ref[...].astype(jnp.float32)
    s = jax.nn.sigmoid(s)                                                   # (Bt, Cout)

    # Scale: per-channel gate broadcast over spatial lanes, native dtype.
    gate = s.astype(o_ref.dtype)[:, :, None]                                # (Bt, C, 1)
    o_ref[...] = (x_ref[...] * gate).astype(o_ref.dtype)


def _se_two_phase_kernel(x_ref, w1t_ref, b1_ref, w2t_ref, b2_ref, o_ref,
                         acc_ref, gate_ref, *, inv_hw, hw, ts):
    # x_ref / o_ref : (C, ts)   w1t_ref: (H1, Cin)  b1_ref: (H1, 1)
    # w2t_ref: (Cout, H1)       b2_ref: (Cout, 1)
    # acc_ref / gate_ref : (C, 1) f32 scratch, persistent across the grid.
    p = pl.program_id(1)   # phase: 0 = accumulate channel sums, 1 = scale
    t = pl.program_id(2)   # spatial tile

    @pl.when(jnp.logical_and(p == 0, t == 0))
    def _():
        acc_ref[...] = jnp.zeros_like(acc_ref)

    @pl.when(p == 0)
    def _():
        x = x_ref[...]                                                      # (C, ts)
        # Mask lanes past the true H*W (last spatial tile may be partial).
        lane = jax.lax.broadcasted_iota(jnp.int32, x.shape, dimension=1)
        valid = lane < (hw - t * ts)
        xm = jnp.where(valid, x, jnp.zeros_like(x))
        acc_ref[...] += jnp.sum(xm, axis=-1, keepdims=True, dtype=jnp.float32)

    @pl.when(jnp.logical_and(p == 1, t == 0))
    def _():
        se = acc_ref[...] * inv_hw                                          # (C, 1) f32
        h = jnp.dot(w1t_ref[...].astype(jnp.float32), se,
                    preferred_element_type=jnp.float32) + b1_ref[...].astype(jnp.float32)
        h = jnp.maximum(h, 0.0)                                             # (H1, 1)
        s = jnp.dot(w2t_ref[...].astype(jnp.float32), h,
                    preferred_element_type=jnp.float32) + b2_ref[...].astype(jnp.float32)
        gate_ref[...] = jax.nn.sigmoid(s)                                   # (Cout, 1)

    @pl.when(p == 1)
    def _():
        # Lanes past H*W on the last tile are out-of-bounds writes and dropped.
        o_ref[...] = (x_ref[...] * gate_ref[...].astype(o_ref.dtype)).astype(o_ref.dtype)


# ---------------------------------------------------------------------------
# Wrapper
# ---------------------------------------------------------------------------

def _vmem_budget_bytes():
    """~85% of the chip's physical per-core VMEM (64 MiB v7x, 128 MiB v5e/v6e)."""
    try:
        cap = int(pltpu.get_tpu_info().vmem_capacity_bytes)
    except Exception:
        cap = 64 << 20   # conservative fallback: v7x per-TensorCore VMEM
    return int(cap * 0.85)


def _choose_batch_tile(B, slab_bytes, usable_bytes):
    """Largest divisor Bt of B s.t. double-buffered in+out tiles fit VMEM,
    stopping once each DMA reaches ~2 MiB, and keeping B//Bt >= 2 (megacore)."""
    target = 2 << 20
    bt = 1
    for cand in range(1, B + 1):
        if B % cand:
            continue
        if 4 * cand * slab_bytes > usable_bytes:
            break
        if B >= 2 and B // cand < 2:
            break
        bt = cand
        if cand * slab_bytes >= target:
            break
    return bt


def se_block(x_nchw, w1, b1, w2, b2, *, donate_x=False,
             _force_two_phase=False, _spatial_tile=None):
    """x_nchw: (B, C, H, W); w1: (Cin, H1); b1: (H1,); w2: (H1, Cout); b2: (Cout,)."""
    B, C, H, W = x_nchw.shape
    Cin, H1 = w1.shape
    Cout = w2.shape[1]
    assert Cin == C and Cout == C, "broadcast x * se requires Cout == Cin == C"

    HW = H * W
    itemsize = jnp.dtype(x_nchw.dtype).itemsize
    x_flat = x_nchw.reshape(B, C, HW)          # no padding: full-extent last dim

    budget = _vmem_budget_bytes()
    slab = C * HW * itemsize                   # one per-batch (C, HW) slab
    weight_bytes = (Cin * H1 + H1 + H1 * Cout + Cout) * jnp.dtype(w1.dtype).itemsize
    slack = 4 << 20                            # layout padding + compiler scratch

    single_pass_ok = (4 * slab + weight_bytes + slack <= budget) and not _force_two_phase
    io_alias = {0: 0} if donate_x else {}

    if single_pass_ok:
        # ---- Single-pass path: one read + one write of x per batch group. ----
        Bt = _choose_batch_tile(B, slab, budget - weight_bytes - slack)
        grid = (B // Bt,)
        b1r = b1.reshape(1, H1)
        b2r = b2.reshape(1, Cout)
        kernel = functools.partial(_se_single_pass_kernel, inv_hw=1.0 / HW)
        vmem_limit = int(min(budget, max(32 << 20, 4 * Bt * slab + weight_bytes + slack)))
        cost = pl.CostEstimate(
            flops=int(3 * B * C * HW + 2 * B * (Cin * H1 + H1 * Cout)),
            transcendentals=int(B * Cout),
            bytes_accessed=int(2 * B * C * HW * itemsize),
        )
        out_flat = pl.pallas_call(
            kernel,
            out_shape=jax.ShapeDtypeStruct((B, C, HW), x_nchw.dtype),
            grid=grid,
            in_specs=[
                pl.BlockSpec((Bt, C, HW), lambda i: (i, 0, 0)),   # x slab(s)
                pl.BlockSpec((Cin, H1), lambda i: (0, 0)),
                pl.BlockSpec((1, H1), lambda i: (0, 0)),
                pl.BlockSpec((H1, Cout), lambda i: (0, 0)),
                pl.BlockSpec((1, Cout), lambda i: (0, 0)),
            ],
            out_specs=pl.BlockSpec((Bt, C, HW), lambda i: (i, 0, 0)),
            compiler_params=pltpu.CompilerParams(
                dimension_semantics=("parallel",),
                vmem_limit_bytes=vmem_limit,
            ),
            cost_estimate=cost,
            input_output_aliases=io_alias,
        )(x_flat, w1, b1r, w2, b2r)
    else:
        # ---- Two-phase spatially-tiled fallback (large C*H*W feature maps). ----
        if _spatial_tile is not None:
            ts = int(_spatial_tile)
        else:
            usable = max(budget - weight_bytes - slack, 1 << 20)
            ts = (usable // (8 * C * itemsize)) // 128 * 128
            ts = max(128, min(ts, pl.cdiv(HW, 128) * 128))
        nt = pl.cdiv(HW, ts)

        # Column-major parameters so the gate lands as (Cout, 1) (lane broadcast).
        w1t = w1.T
        b1c = b1.reshape(H1, 1)
        w2t = w2.T
        b2c = b2.reshape(Cout, 1)

        kernel = functools.partial(_se_two_phase_kernel, inv_hw=1.0 / HW, hw=HW, ts=ts)
        vmem_limit = int(min(budget, max(32 << 20, 6 * C * ts * itemsize + weight_bytes + slack)))
        cost = pl.CostEstimate(
            flops=int(4 * B * C * HW + 2 * B * (Cin * H1 + H1 * Cout)),
            transcendentals=int(B * Cout),
            bytes_accessed=int(3 * B * C * HW * itemsize),   # 2 reads + 1 write
        )
        out_flat = pl.pallas_call(
            kernel,
            out_shape=jax.ShapeDtypeStruct((B, C, HW), x_nchw.dtype),
            grid=(B, 2, nt),
            in_specs=[
                pl.BlockSpec((None, C, ts), lambda b, p, t: (b, 0, t)),
                pl.BlockSpec((H1, Cin), lambda b, p, t: (0, 0)),
                pl.BlockSpec((H1, 1), lambda b, p, t: (0, 0)),
                pl.BlockSpec((Cout, H1), lambda b, p, t: (0, 0)),
                pl.BlockSpec((Cout, 1), lambda b, p, t: (0, 0)),
            ],
            # Phase 0 never writes: keep the out block index constant (t*p == 0)
            # so no write-backs happen until phase 1 fills each tile.
            out_specs=pl.BlockSpec((None, C, ts), lambda b, p, t: (b, 0, t * p)),
            scratch_shapes=[
                pltpu.VMEM((C, 1), jnp.float32),   # per-channel sum accumulator
                pltpu.VMEM((C, 1), jnp.float32),   # sigmoid gate
            ],
            compiler_params=pltpu.CompilerParams(
                dimension_semantics=("parallel", "arbitrary", "arbitrary"),
                vmem_limit_bytes=vmem_limit,
            ),
            cost_estimate=cost,
            input_output_aliases=io_alias,
        )(x_flat, w1t, b1c, w2t, b2c)

    return out_flat.reshape(B, C, H, W)


# ---------------------------------------------------------------------------
# Reference + parameter init
# ---------------------------------------------------------------------------

def init_se_params(key, Cin, Cout, dtype=jnp.float32):
    """Deterministic synthetic parameters matching nn.Linear shapes.

    PyTorch stores Linear weights as (out, in); we keep them as (in, out) here
    so the reference computes x @ W directly.
    """
    num_hidden = max(Cout // 16, 4)
    k1, k2, k3, k4 = jax.random.split(key, 4)
    w1 = (jax.random.normal(k1, (Cin, num_hidden), dtype) / jnp.sqrt(Cin)).astype(dtype)
    b1 = (0.01 * jax.random.normal(k2, (num_hidden,), dtype)).astype(dtype)
    w2 = (jax.random.normal(k3, (num_hidden, Cout), dtype) / jnp.sqrt(num_hidden)).astype(dtype)
    b2 = (0.01 * jax.random.normal(k4, (Cout,), dtype)).astype(dtype)
    return w1, b1, w2, b2


def se_block_ref(x, w1, b1, w2, b2):
    """Pure-JAX reference for verification."""
    se = jnp.mean(x, axis=(2, 3))
    h = jnp.maximum(se @ w1 + b1, 0.0)
    s = jax.nn.sigmoid(h @ w2 + b2)
    return x * s[:, :, None, None]


if __name__ == "__main__":
    key = jax.random.PRNGKey(0)
    kx, kp = jax.random.split(key)

    # 1) Default (single-pass) path.
    B, C, H, W = 2, 4, 16, 16
    x = jax.random.normal(kx, (B, C, H, W), jnp.float32)
    w1, b1, w2, b2 = init_se_params(kp, Cin=C, Cout=C)
    out = jax.block_until_ready(se_block(x, w1, b1, w2, b2))
    ref = se_block_ref(x, w1, b1, w2, b2)
    assert out.shape == x.shape and out.dtype == x.dtype
    assert jnp.allclose(out, ref, atol=1e-5, rtol=1e-5), "single-pass mismatch"

    # 2) Batched single-pass path (multiple batches packed per grid step).
    x2 = jax.random.normal(jax.random.PRNGKey(1), (4, 4, 16, 16), jnp.float32)
    w1b, b1b, w2b, b2b = init_se_params(jax.random.PRNGKey(2), Cin=4, Cout=4)
    out2 = jax.block_until_ready(se_block(x2, w1b, b1b, w2b, b2b))
    assert jnp.allclose(out2, se_block_ref(x2, w1b, b1b, w2b, b2b),
                        atol=1e-5, rtol=1e-5), "batched single-pass mismatch"

    # 3) Two-phase spatially-tiled path (tile divides H*W).
    x3 = jax.random.normal(jax.random.PRNGKey(3), (2, 8, 16, 16), jnp.float32)
    w1c, b1c, w2c, b2c = init_se_params(jax.random.PRNGKey(4), Cin=8, Cout=8)
    out3 = jax.block_until_ready(
        se_block(x3, w1c, b1c, w2c, b2c, _force_two_phase=True, _spatial_tile=128))
    assert jnp.allclose(out3, se_block_ref(x3, w1c, b1c, w2c, b2c),
                        atol=1e-5, rtol=1e-5), "two-phase mismatch"

    # 4) Two-phase path with a partial tail tile (H*W not a multiple of 128).
    x4 = jax.random.normal(jax.random.PRNGKey(5), (2, 8, 15, 15), jnp.float32)
    w1d, b1d, w2d, b2d = init_se_params(jax.random.PRNGKey(6), Cin=8, Cout=8)
    out4 = jax.block_until_ready(
        se_block(x4, w1d, b1d, w2d, b2d, _force_two_phase=True, _spatial_tile=128))
    assert jnp.allclose(out4, se_block_ref(x4, w1d, b1d, w2d, b2d),
                        atol=1e-5, rtol=1e-5), "two-phase tail mismatch"

    print("KERNEL_OK")
</pallas_src>

<mosaic_0001>
module attributes {stable_mosaic.version = 11 : i64} {
  func.func @_se_single_pass_kernel(%arg0: i32, %arg1: memref<1x4x256xf32, #tpu.memory_space<vmem>>, %arg2: memref<4x4xf32, #tpu.memory_space<vmem>>, %arg3: memref<1x4xf32, #tpu.memory_space<vmem>>, %arg4: memref<4x4xf32, #tpu.memory_space<vmem>>, %arg5: memref<1x4xf32, #tpu.memory_space<vmem>>, %arg6: memref<1x4x256xf32, #tpu.memory_space<vmem>>) attributes {dimension_semantics = [#tpu.dimension_semantics<parallel>], iteration_bounds = array<i64: 2>, scalar_prefetch = 0 : i64, scratch_operands = 0 : i64, tpu.core_type = #tpu.core_type<tc>, window_params = [{transform_indices = @transform_0, window_bounds = array<i64: 1, 4, 256>}, {pipeline_mode = #tpu.pipeline_mode<synchronous>, transform_indices = @transform_1, window_bounds = array<i64: 4, 4>}, {pipeline_mode = #tpu.pipeline_mode<synchronous>, transform_indices = @transform_2, window_bounds = array<i64: 1, 4>}, {pipeline_mode = #tpu.pipeline_mode<synchronous>, transform_indices = @transform_3, window_bounds = array<i64: 4, 4>}, {pipeline_mode = #tpu.pipeline_mode<synchronous>, transform_indices = @transform_4, window_bounds = array<i64: 1, 4>}, {transform_indices = @transform_5, window_bounds = array<i64: 1, 4, 256>}]} {
    %c0 = arith.constant 0 : index
    %c0_0 = arith.constant 0 : index
    %c0_1 = arith.constant 0 : index
    %0 = vector.load %arg1[%c0, %c0_0, %c0_1] : memref<1x4x256xf32, #tpu.memory_space<vmem>>, vector<1x4x256xf32>
    %cst = arith.constant dense<0.000000e+00> : vector<1x4xf32>
    %1 = vector.multi_reduction <add>, %0, %cst [2] : vector<1x4x256xf32> to vector<1x4xf32>
    %cst_2 = arith.constant 3.906250e-03 : f32
    %2 = vector.broadcast %cst_2 : f32 to vector<1x4xf32>
    %3 = arith.mulf %1, %2 : vector<1x4xf32>
    %c0_3 = arith.constant 0 : index
    %c0_4 = arith.constant 0 : index
    %4 = vector.load %arg2[%c0_3, %c0_4] : memref<4x4xf32, #tpu.memory_space<vmem>>, vector<4x4xf32>
    %cst_5 = arith.constant dense<0.000000e+00> : vector<1x4xf32>
    %5 = tpu.matmul %3, %4, %cst_5 {dimension_numbers = #tpu.dot_dimension_numbers<[1], [0], [0], [1], [0, 0, 1, 1], [], []>} : vector<1x4xf32>, vector<4x4xf32>, vector<1x4xf32> -> vector<1x4xf32>
    %c0_6 = arith.constant 0 : index
    %c0_7 = arith.constant 0 : index
    %6 = vector.load %arg3[%c0_6, %c0_7] : memref<1x4xf32, #tpu.memory_space<vmem>>, vector<1x4xf32>
    %7 = arith.addf %5, %6 : vector<1x4xf32>
    %cst_8 = arith.constant 0.000000e+00 : f32
    %8 = vector.broadcast %cst_8 : f32 to vector<1x4xf32>
    %9 = arith.maximumf %7, %8 : vector<1x4xf32>
    %c0_9 = arith.constant 0 : index
    %c0_10 = arith.constant 0 : index
    %10 = vector.load %arg4[%c0_9, %c0_10] : memref<4x4xf32, #tpu.memory_space<vmem>>, vector<4x4xf32>
    %cst_11 = arith.constant dense<0.000000e+00> : vector<1x4xf32>
    %11 = tpu.matmul %9, %10, %cst_11 {dimension_numbers = #tpu.dot_dimension_numbers<[1], [0], [0], [1], [0, 0, 1, 1], [], []>} : vector<1x4xf32>, vector<4x4xf32>, vector<1x4xf32> -> vector<1x4xf32>
    %c0_12 = arith.constant 0 : index
    %c0_13 = arith.constant 0 : index
    %12 = vector.load %arg5[%c0_12, %c0_13] : memref<1x4xf32, #tpu.memory_space<vmem>>, vector<1x4xf32>
    %13 = arith.addf %11, %12 : vector<1x4xf32>
    %14 = arith.negf %13 : vector<1x4xf32>
    %15 = math.exp %14 : vector<1x4xf32>
    %cst_14 = arith.constant 1.000000e+00 : f32
    %16 = vector.broadcast %cst_14 : f32 to vector<1x4xf32>
    %17 = arith.addf %16, %15 : vector<1x4xf32>
    %18 = arith.divf %16, %17 : vector<1x4xf32>
    %19 = vector.shape_cast %18 : vector<1x4xf32> to vector<1x4x1xf32>
    %c0_15 = arith.constant 0 : index
    %c0_16 = arith.constant 0 : index
    %c0_17 = arith.constant 0 : index
    %20 = vector.load %arg1[%c0_15, %c0_16, %c0_17] : memref<1x4x256xf32, #tpu.memory_space<vmem>>, vector<1x4x256xf32>
    %21 = vector.broadcast %19 : vector<1x4x1xf32> to vector<1x4x256xf32>
    %22 = arith.mulf %20, %21 : vector<1x4x256xf32>
    %c0_18 = arith.constant 0 : index
    %c0_19 = arith.constant 0 : index
    %c0_20 = arith.constant 0 : index
    %23 = vector.load %arg6[%c0_18, %c0_19, %c0_20] : memref<1x4x256xf32, #tpu.memory_space<vmem>>, vector<1x4x256xf32>
    tpu.vector_store %arg6[%c0_18, %c0_19, %c0_20], %22 {strides = array<i32>} : memref<1x4x256xf32, #tpu.memory_space<vmem>>, vector<1x4x256xf32>,
    return
  }
  func.func @transform_0(%arg0: i32) -> (i32, i32, i32) {
    %c0_i32 = arith.constant 0 : i32
    %c0_i32_0 = arith.constant 0 : i32
    %c0_i32_1 = arith.constant 0 : i32
    return %arg0, %c0_i32, %c0_i32_0 : i32, i32, i32
  }
  func.func @transform_1(%arg0: i32) -> (i32, i32) {
    %c0_i32 = arith.constant 0 : i32
    %c0_i32_0 = arith.constant 0 : i32
    %c0_i32_1 = arith.constant 0 : i32
    return %c0_i32, %c0_i32_0 : i32, i32
  }
  func.func @transform_2(%arg0: i32) -> (i32, i32) {
    %c0_i32 = arith.constant 0 : i32
    %c0_i32_0 = arith.constant 0 : i32
    %c0_i32_1 = arith.constant 0 : i32
    return %c0_i32, %c0_i32_0 : i32, i32
  }
  func.func @transform_3(%arg0: i32) -> (i32, i32) {
    %c0_i32 = arith.constant 0 : i32
    %c0_i32_0 = arith.constant 0 : i32
    %c0_i32_1 = arith.constant 0 : i32
    return %c0_i32, %c0_i32_0 : i32, i32
  }
  func.func @transform_4(%arg0: i32) -> (i32, i32) {
    %c0_i32 = arith.constant 0 : i32
    %c0_i32_0 = arith.constant 0 : i32
    %c0_i32_1 = arith.constant 0 : i32
    return %c0_i32, %c0_i32_0 : i32, i32
  }
  func.func @transform_5(%arg0: i32) -> (i32, i32, i32) {
    %c0_i32 = arith.constant 0 : i32
    %c0_i32_0 = arith.constant 0 : i32
    %c0_i32_1 = arith.constant 0 : i32
    return %arg0, %c0_i32, %c0_i32_0 : i32, i32, i32
  }
}

</mosaic_0001>

<bundles_post_ra>
// kernel: tpu_custom_call.1
= control target key start
LH: loop header
LB: loop body
LE: loop exit
PB: predicated region body
PF: predicated region fallthrough
CT: control target
= control target key end

     0   :  { %10 = vsyncpa [#allocation3], 0  ;;  %s1034_s0 = inlined_call_operand.hbm [shape: f32[2,4,256], index: 0, kind: input, shape index: {}]   ;;  %s1035_s1 = inlined_call_operand.hbm [shape: f32[4,4], index: 1, kind: input, shape index: {}]   ;;  %s1036_s2 = inlined_call_operand.vmem [shape: f32[1,4], index: 2, kind: input, shape index: {}]   ;;  %s1037_s3 = inlined_call_operand.vmem [shape: f32[4,4], index: 3, kind: input, shape index: {}]   ;;  %s1038_s4 = inlined_call_operand.vmem [shape: f32[1,4], index: 4, kind: input, shape index: {}]   ;;  %s1039_s5 = inlined_call_operand.hbm [shape: f32[2,4,256], index: 5, kind: output, shape index: {}]  }
   0x1   :  { %12 = vsyncpa [#allocation3 + $0x1], 0 }
   0x2   :  { %13 = vsyncpa [#allocation6], 0 }
   0x3   :  { %14 = vsyncpa [#allocation4], 0 }
   0x4   :  { %16 = vsyncpa [#allocation4 + $0x1], 0  ;;  %s816_s18 = smov 0   ;;  %s818_s19 = smov 0  }
   0x5   :  { %s820_s20 = smov 0   ;;  %s822_s21 = smov 0  }
   0x6 LB: > { %s837_s22 = sadd.s32 4294967295, %s778_s21   ;;  %s548_s23 = sadd.s32 4294967294, %s778_s21   ;;  %s778_s21 = sphi %s822_s21, %s1063_s21   ;;  %s774_s20 = sphi %s820_s20, %s1062_s20   ;;  %s770_s19 = sphi %s818_s19, %s1061_s19   ;;  %s766_s18 = sphi %s816_s18, %s1060_s18  }
   0x7   : > { %p42_p0 = scmp.ne.s32.totalorder %s770_s19, %s766_s18  ;;  %p1040_p1 = scmp.eq.s32.totalorder %s837_s22, 0 }
   0x8   : > { %p156_p3 = scmp.eq.s32.totalorder %s548_s23, 1  ;;  %p549_p5 = scmp.ge.s32.totalorder %s778_s21, 1 }
   0x9   : > { %p846_p4 = por %p1040_p1, %p42_p0  ;;  %p163_p7 = scmp.lt.s32.totalorder %s778_s21, 3 }
   0xa   : > { %p851_p6 = por %p156_p3, %p42_p0  ;;  %s780_s27 = smov [#allocation5]  }
   0xb   : > { %s1043_s24 = scalar_select %p846_p4, 1, 0 }
   0xc   : > { %s1044_s25 = scalar_select %p851_p6, 1, 0 }
   0xd   : > { %p856_p8 = pnand %p549_p5, %p163_p7  ;;  %s176_s28 = sshll.u32 %s780_s27, 4  ;;  %s177_s28 = int_to_ptr.vmem [resolvable:$true] %s176_s28 }
   0xe   : > { %s864_s29 = sadd.s32 1, %s778_s21   ;;  %s29_s8 = sadd.s32 1, %s774_s20 }
   0xf   : > { %s1045_s26 = scalar_select %p856_p8, 1, 0 }
  0x10   : > { %p593_p10 = pneg %p856_p8  ;;  %s26_s6 = ssub.s32 %s778_s21, %s864_s29 }
  0x11   : > { %p874_p12 = scmp.eq.s32.totalorder %s26_s6, 0  ;;  %s650_s11 = scalar_lea.hbm %s1035_s1, 64 }
  0x12   : > { %p868_p11 = pnand %p593_p10, %p1040_p1  ;;  %p651_p0 = scmp.ne.s32.totalorder %s1035_s1, %s650_s11 }
  0x13   : > { %s1047_s7 = scalar_select %p874_p12, 1, 0 }
  0x14   : > { %p652_p3 = pneg %p868_p11  ;;  %p657_p10 = scmp.lt.u32.totalorder %s650_s11, %s1035_s1 }
  0x16   : > { %p653_p5 = pnand %p652_p3, %p651_p0 }
  0x18   : > { %p654_p7 = pneg %p653_p5 }
  0x1a   : > { %p659_p9 = pnand %p657_p10, %p654_p7 }
  0x1c   : > { %662 = shalt.err (!%p659_p9)
}
  0x1d   : > { %s663_s16 = scalar_lea.vmem %s177_s28, 64  ;;  %p671_p6 = scmp.lt.s32.totalorder %s177_s28, %s177_s28 }
  0x1e   : > { %p664_p1 = scmp.ne.s32.totalorder %s177_s28, %s663_s16  ;;  %p672_p4 = scmp.lt.s32.totalorder %s663_s16, %s663_s16 }
  0x20   : > { %p666_p2 = pnand %p664_p1, %p652_p3  ;;  %p673_p8 = por %p672_p4, %p671_p6 }
  0x22   : > { %p667_p13 = pneg %p666_p2 }
  0x24   : > { %p674_p12 = pnand %p673_p8, %p667_p13 }
  0x26   : > { %677 = shalt.err (!%p674_p12)
}
  0x27   : > { %596 = dma.hbm_to_vmem [thread:$0]  (!%p868_p11), %s1035_s1, 64, %s177_s28, [#allocation6]  }
  0x28   : > { %p1048_p1 = scmp.ne.s32.totalorder %s1047_s7, 0  ;;  %p37_p2 = scmp.eq.s32.totalorder %s778_s21, 0 }
  0x29   : > { %p1049_p4 = scmp.ne.s32.totalorder %s774_s20, %s770_s19  ;;  %p1050_p6 = scmp.eq.s32.totalorder %s837_s22, 1 }
  0x2a   : > { %s900_s27 = scalar_select %p1048_p1, %s774_s20, %s29_s8  }
  0x2b   : > { %p908_p8 = por %p1050_p6, %p1049_p4  ;;  %p606_p9 = scmp.lt.s32.totalorder %s778_s21, 2 }
  0x2c   : > { %s196_s6 = sand.u32 1, %s774_s20   ;;  %p1052_p12 = pmov %p1049_p4 }
  0x2d   : > { %s552_s9 = sshll.u32 %s196_s6, 3  ;;  %s569_s10 = sshll.u32 %s778_s21, 7 }
  0x2e   : > { %p38_p13 = por %p37_p2, %p1052_p12  ;;  %s921_s28 = scalar_lea.hbm %s1034_s0, %s569_s10 }
  0x2f   : > { %s200_s7 = scalar_lea.vmem [#allocation2], %s552_s9  ;;  %s197_s14 = scalar_lea.sflag [#allocation3], %s196_s6 }
  0x30   : > { %s208_s8 = sshll.u32 %s200_s7, 4  ;;  %p923_p11 = pnand %p606_p9, %p38_p13  ;;  %s927_s8 = int_to_ptr.vmem [resolvable:$true] %s208_s8 }
  0x31   : > { %s678_s15 = scalar_lea.hbm %s921_s28, 128  ;;  %s683_s23 = scalar_lea.hbm %s1034_s0, 256 }
  0x32   : > { %p679_p0 = scmp.ne.s32.totalorder %s921_s28, %s678_s15  ;;  %p680_p3 = pneg %p923_p11 }
  0x33   : > { %p684_p10 = scmp.lt.u32.totalorder %s921_s28, %s1034_s0  ;;  %p685_p1 = scmp.lt.u32.totalorder %s683_s23, %s678_s15 }
  0x34   : > { %p681_p5 = pnand %p680_p3, %p679_p0  ;;  %p687_p4 = scmp.lt.u32.totalorder %s678_s15, %s921_s28 }
  0x35   : > { %p686_p2 = por %p685_p1, %p684_p10 }
  0x36   : > { %p682_p7 = pneg %p681_p5 }
  0x37   : > { %p688_p6 = por %p687_p4, %p686_p2 }
  0x39   : > { %p689_p9 = pnand %p688_p6, %p682_p7 }
  0x3b   : > { %692 = shalt.err (!%p689_p9)
}
  0x3c   : > { %s693_s6 = scalar_lea.vmem %s927_s8, 128  ;;  %s781_s11 = smov [#allocation2]  }
  0x3d   : > { %p694_p12 = scmp.ne.s32.totalorder %s927_s8, %s693_s6  ;;  %s698_s12 = sshll.u32 %s781_s11, 4  ;;  %s699_s12 = int_to_ptr.vmem [resolvable:$false] %s698_s12 }
  0x3e   : > { %s700_s7 = scalar_lea.vmem %s699_s12, 256  ;;  %p701_p5 = scmp.lt.s32.totalorder %s927_s8, %s699_s12 }
  0x3f   : > { %p696_p13 = pnand %p694_p12, %p680_p3  ;;  %p702_p10 = scmp.lt.s32.totalorder %s700_s7, %s693_s6 }
  0x41   : > { %p697_p0 = pneg %p696_p13  ;;  %p703_p1 = por %p702_p10, %p701_p5 }
  0x43   : > { %p704_p2 = pnand %p703_p1, %p697_p0 }
  0x45   : > { %707 = shalt.err (!%p704_p2)
}
  0x46   : > { %600 = dma.hbm_to_vmem [thread:$0]  (!%p923_p11), %s921_s28, 128, %s927_s8, %s197_s14  }
  0x47   : > { %p1054_p7 = scmp.ne.s32.totalorder %s1045_s26, 0 }
  0x48   : > { %s957_s15 = sand.u32 (!%p1054_p7), 1, %s770_s19   ;;  %p1055_p3 = scmp.ne.s32.totalorder (!%p1054_p7), %s1043_s24, 0 }
  0x49   : > { %217 = sbr.rel (%p1054_p7) target bundleno = 827 (0x33b), region = 40  ;;  %s556_s16 = sshll.u32 (!%p1054_p7), %s957_s15, 3 }
  0x4a   : > { %s220_s17 = scalar_lea.sflag (!%p1054_p7), [#allocation3], %s957_s15  ;;  %s223_s23 = scalar_lea.vmem (!%p1054_p7), [#allocation2], %s556_s16 }
  0x50   : > { %753 = dma.done.wait (%p1055_p3), %s220_s17, 128  }
  0x51   : > { %755 = vsyncadd (%p1055_p3), %s220_s17, 4294967168  ;;  %p1056_p11 = scmp.eq.s32.totalorder %s837_s22, 0 }
  0x53   : > { %757 = dma.done.wait (%p1056_p11), [#allocation6], 64   ;;  %p1057_p4 = pmov %p1056_p11 }
  0x54   : > { %vm258_vm0 = vcmask 1043456   ;;  %v254_v0 = vld [vmem:[%s223_s23] sm:$0xff]  ;;  %v782_v5 = vmov 0.0   ;;  %v265_v6 = vld [vmem:[#allocation5] sm:$0xf]  ;;  %vm783_vm1 = vmmov 0   ;;  %v268_v7 = vlaneseq }
  0x55   : > { %759 = vsyncadd (%p1057_p4), [#allocation6], 4294967232  ;;  %v256_v1 = vcombine.high %v254_v0, %v254_v0  ;;  %v259_v2 = vsel %vm258_vm0, %v254_v0, 0.0  ;;  %575 = vmatprep.subr.mxu0 %v782_v5  ;;  %580 = vmatprep.subr.mxu1 %v782_v5  ;;  %vm274_vm2 = vcmask 31744   ;;  %v351_v14 = vld [vmem:[%s1037_s3] sm:$0xf] }
  0x56   : > { %576 = vmatpush3.msk.msra.mxu0 %vm258_vm0, %v265_v6  ;;  %577 = vmatprep.mubr.msk.f32.mxu0 %vm783_vm1, %v782_v5  ;;  %v269_v8 = vand.u32 127, %v268_v7  ;;  %v271_v9 = vshrl.u32 %v268_v7, 7  ;;  %v266_v15 = vld [vmem:[%s1036_s2] sm:$0x1]  ;;  %v784_v30 = vmov 839922192  }
  0x57   : > { %v260_v3 = vsel %vm258_vm0, %v256_v1, 0.0  ;;  %582 = vmatprep.mubr.msk.f32.mxu1 %vm783_vm1, %v782_v5  ;;  %581 = vmatpush3.msk.msra.mxu1 %vm258_vm0, %v351_v14  ;;  %v352_v20 = vld [vmem:[%s1038_s4] sm:$0x1]  ;;  %v444_v31 = vunpack.c.l.s4 %v784_v30  ;;  %s570_s9 = sshll.u32 %s837_s22, 7  ;;  %s253_s10 = scalar_lea.vmem [#allocation7], %s556_s16 }
  0x58   : > { %v261_v4 = vadd.f32 %v260_v3, %v259_v2  ;;  %v272_v10 = vsub.s32 %v269_v8, %v271_v9  ;;  %v437_v27 = vsub.s32 0, %v271_v9  ;;  %s468_s6 = sshll.u32 %s253_s10, 4  ;;  %s990_s7 = scalar_lea.hbm %s1039_s5, %s570_s9  ;;  %s992_s6 = int_to_ptr.vmem [resolvable:$true] %s468_s6 }
  0x59   : > { %v445_v32 = vunpack.c.0.s8 %v444_v31  ;;  %s454_s17 = scalar_lea.sflag [#allocation4], %s957_s15  ;;  %s708_s23 = scalar_lea.vmem %s992_s6, 128 }
  0x5a   : > { %262 = vadd.xlane.f32.xlu0 %v261_v4  ;;  %p709_p6 = scmp.ne.s32.totalorder %s992_s6, %s708_s23  ;;  %s785_s22 = smov [#allocation7]  }
  0x5b   : > { %v448_v33 = vsub.s32 %v445_v32, %v271_v9  ;;  %s712_s16 = sshll.u32 %s785_s22, 4  ;;  %s713_s16 = int_to_ptr.vmem [resolvable:$false] %s712_s16 }
  0x5c   : > { %p710_p9 = pnand %p709_p6, %p908_p8  ;;  %s714_s24 = scalar_lea.vmem %s713_s16, 256 }
  0x5d   : > { %p715_p13 = scmp.lt.s32.totalorder %s992_s6, %s713_s16  ;;  %p716_p0 = scmp.lt.s32.totalorder %s714_s24, %s708_s23 }
  0x5e   : > { %p711_p12 = pneg %p710_p9 }
  0x5f   : > { %p717_p5 = por %p716_p0, %p715_p13 }
  0x61   : > { %p718_p10 = pnand %p717_p5, %p711_p12 }
  0xe7   : > { %v263_v11 = vpop.xlane.xlu0 %262 }
  0xe8   : > { %v264_v12 = vmul.f32 0.00390625, %v263_v11 }
  0xea   : > { %v273_v13 = vrot.slane %v264_v12, %v272_v10 }
  0xec   : > { %578 = vmatmul.mubr.msk.f32.vlgmr.msra.gmra.mrb[0].mxu0 %vm274_vm2, %v273_v13 }
 0x1bf   : > { %v346_v16 = vpop.f32.mrb[0].mxu0 }
 0x1c0   : > { %v347_v17 = vadd.f32 %v346_v16, %v266_v15  ;;  %v579_v18 = vpop.f32.mrb[1].mxu0 }
 0x1c2   : > { %v350_v19 = vmax.f32 %v347_v17, 0.0 }
 0x1c4   : > { %583 = vmatmul.mubr.msk.f32.vlgmr.msra.gmra.mrb[0].mxu1 %vm274_vm2, %v350_v19 }
 0x297   : > { %v425_v21 = vpop.f32.mrb[0].mxu1 }
 0x298   : > { %v426_v22 = vadd.f32 %v425_v21, %v352_v20  ;;  %v584_v23 = vpop.f32.mrb[1].mxu1 }
 0x29a   : > { %v563_v24 = vmul.f32 -1.442695, %v426_v22 }
 0x29c   : > { %646 = vpow2.f32 %v563_v24 }
 0x2a6   : > { %v647_v25 = vpop.eup %646 }
 0x2a7   : > { %v432_v26 = vadd.f32 1.0, %v647_v25 }
 0x2a9   : > { %648 = vrcp.f32 %v432_v26 }
 0x2b3   : > { %v649_v28 = vpop.eup %648 }
 0x2b4   : > { %v438_v29 = vrot.slane %v649_v28, %v437_v27 }
 0x2b6   : > { %440 = vbcast.lane.b32.xlu0 %v438_v29, 256 }
 0x328   : > { %v441_v34 = vpop.permute.xlu0 %440 }
 0x329   : > { %v449_v35 = vrot.slane %v441_v34, %v448_v33 }
 0x32b   : > { %v451_v36 = vmul.f32 %v449_v35, %v254_v0 }
 0x32d   : > { %452 = vst [vmem:[%s253_s10] sm:$0xff] %v451_v36 }
 0x32e   : > { %721 = shalt.err (!%p718_p10)
}
 0x32f   : > { %s722_s15 = scalar_lea.hbm %s990_s7, 128  ;;  %s726_s8 = scalar_lea.hbm %s1039_s5, 256 }
 0x330   : > { %p723_p1 = scmp.ne.s32.totalorder %s990_s7, %s722_s15  ;;  %p727_p3 = scmp.lt.u32.totalorder %s990_s7, %s1039_s5 }
 0x331   : > { %p728_p11 = scmp.lt.u32.totalorder %s726_s8, %s722_s15  ;;  %p730_p6 = scmp.lt.u32.totalorder %s722_s15, %s990_s7 }
 0x332   : > { %p724_p2 = pnand %p723_p1, %p908_p8 }
 0x333   : > { %p729_p4 = por %p728_p11, %p727_p3 }
 0x334   : > { %p725_p7 = pneg %p724_p2 }
 0x335   : > { %p731_p9 = por %p730_p6, %p729_p4 }
 0x337   : > { %p732_p12 = pnand %p731_p9, %p725_p7 }
 0x339   : > { %735 = shalt.err (!%p732_p12)
}
 0x33a   : > { %591 = dma.vmem_to_hbm [thread:$0]  (%p908_p8), %s992_s6, 128, %s990_s7, %s454_s17  }
 0x33b PF: > { %s480_s9 = sand.u32 1, %s766_s18   ;;  %p1058_p13 = scmp.ne.s32.totalorder %s1044_s25, 0 }
 0x33c   : > { %p1059_p0 = scmp.ge.s32.totalorder %s778_s21, 2  ;;  %s481_s10 = scalar_lea.sflag [#allocation4], %s480_s9 }
 0x33e   : > { %p602_p5 = pnand %p1059_p0, %p1058_p13 }
 0x340   : > { %761 = dma.done.wait (!%p602_p5), %s481_s10, 128  }
 0x341   : > { %763 = vsyncadd (!%p602_p5), %s481_s10, 4294967168  ;;  %p19_p10 = scmp.ge.s32.totalorder %s864_s29, 4   ;;  %s1060_s18 = smov %s770_s19 }
 0x342   : > { %s1061_s19 = smov %s774_s20  ;;  %s1062_s20 = smov %s900_s27 }
 0x343   : > { %s1063_s21 = smov %s864_s29  ;;  %21 = sbr.rel (!%p19_p10) target bundleno = 6 (0x6), region = 89 }
 0x34a   :  { %486 = vsyncpa [#allocation3], 1 }
 0x34b   :  { %488 = vsyncpa [#allocation3 + $0x1], 1 }
 0x34c   :  { %489 = vsyncpa [#allocation6], 1 }
 0x34d   :  { %490 = vsyncpa [#allocation4], 1 }
 0x34e   :  { %492 = vsyncpa [#allocation4 + $0x1], 1 }

</bundles_post_ra>
